<compile_context>
chip_gen: v5e
topology: v5e:2x2
jax: 0.10.0
libtpu: 0.0.40
codegen_flags: <defaults>
</compile_context>

<pallas_src>
import functools

import jax
import jax.numpy as jnp
from jax.experimental import pallas as pl
from jax.experimental.pallas import tpu as pltpu

BN_EPS = 1e-5
SUPERNET_CHANNELS = (4, 8, 12, 16)   # SuperNetSetting[layer_id = 0]
HALO = 128                           # halo lanes per M tile; must be >= (kh-1)*Wp + (kw-1)


def _round_up(v, m):
    return -(-v // m) * m


def _pass1_vmem_bytes(tile_m, cin, cout, taps, compute_bytes, y_bytes):
    """Rough per-tile VMEM footprint of pass 1 (double-buffered BlockSpec I/O + scratch)."""
    return (2 * cin * (tile_m + HALO) * compute_bytes      # activation tile (double buffered)
            + 2 * cin * HALO * compute_bytes               # halo block (double buffered)
            + 2 * cout * tile_m * y_bytes                  # y writeback tile (double buffered)
            + taps * cin * tile_m * compute_bytes          # im2col scratch
            + cin * (tile_m + HALO) * compute_bytes        # window scratch
            + 2 * cout * tile_m * 4                        # f32 accumulator / masked values
            + 2 * 2 * cout * 128 * 4                       # resident lane-wide stat blocks
            + 2 * cout * taps * cin * compute_bytes)       # weights (double buffered)


def _pick_tile_m(cin, cout, mp, taps, compute_bytes, y_bytes,
                 budget_bytes=40 * 1024 * 1024):
    # 40 MiB budget is safe on every generation (v7x has 64 MiB physical VMEM per TC);
    # cap at 4096 lanes and at the (2-core split) problem size so tiny layers don't
    # pad to a huge tile.
    cap = min(4096, max(HALO, _round_up(-(-mp // 2), HALO)))
    tile = HALO
    t = HALO
    while t <= cap:
        if _pass1_vmem_bytes(t, cin, cout, taps, compute_bytes, y_bytes) > budget_bytes:
            break
        tile = t
        t += HALO
    return tile


@functools.partial(
    jax.jit,
    static_argnames=("supernet_channels", "padding", "compute_dtype", "out_dtype",
                     "tile_m", "fuse_relu", "lenth"))
def mix_channel_conv_bn(x_nchw, conv_w_oihw, arch_weight, *,
                        supernet_channels=SUPERNET_CHANNELS,
                        padding=1,
                        compute_dtype=jnp.bfloat16,
                        out_dtype=None,
                        tile_m=None,
                        fuse_relu=False,
                        lenth=None):
    """Forward of MixChannelConvBN (stride=1, bias=False, affine=False, batch stats)."""
    N, Cin, H, W = x_nchw.shape
    Cout, Cin2, kh, kw = conv_w_oihw.shape
    assert Cin2 == Cin
    assert 2 * padding == kh - 1 == kw - 1, "stride-1 'same' conv (module uses k=3, p=1)"
    if out_dtype is None:
        out_dtype = x_nchw.dtype
    y_dtype = compute_dtype

    Hp, Wp = H + 2 * padding, W + 2 * padding
    max_shift = (kh - 1) * Wp + (kw - 1)
    # TODO(synk): for W > ~61 the halo must span more than one 128-lane block.
    assert max_shift <= HALO

    taps = kh * kw
    compute_bytes = jnp.dtype(compute_dtype).itemsize
    # Pad Cin so each im2col row-block is an integer number of 32-bit sublanes
    # (bf16 packs two rows per physical sublane).  Zero rows contribute nothing.
    row_pack = max(1, 4 // compute_bytes)
    Cin_p = _round_up(Cin, row_pack)
    K2 = taps * Cin_p

    Mp = N * Hp * Wp                       # flattened padded spatial positions
    if tile_m is None:
        tile_m = _pick_tile_m(Cin_p, Cout, Mp, taps, compute_bytes,
                              jnp.dtype(y_dtype).itemsize)
    assert tile_m % HALO == 0

    n_tiles = pl.cdiv(Mp, tile_m)
    n_tiles += n_tiles % 2                 # even so pass 1 can split across 2 TCs (v7x)
    n_half = n_tiles // 2
    Mp_pad = n_tiles * tile_m
    Lx = Mp_pad + tile_m                   # zero tail keeps the last tile's halo in range
    assert Lx < (1 << 24)                  # exact f32 flat-position math for the in-kernel mask

    vmem_need = _pass1_vmem_bytes(tile_m, Cin_p, Cout, taps, compute_bytes,
                                  jnp.dtype(y_dtype).itemsize)
    vmem_limit = int(min(48 * 1024 * 1024, max(32 * 1024 * 1024, 2 * vmem_need)))

    # ---- host-side layout glue (cast to compute dtype FIRST so glue traffic is halved) ----
    xp = jnp.pad(x_nchw.astype(compute_dtype),
                 ((0, 0), (0, 0), (padding, padding), (padding, padding)))
    xt = jnp.transpose(xp, (1, 0, 2, 3)).reshape(Cin, Mp)
    xt = jnp.pad(xt, ((0, Cin_p - Cin), (0, Lx - Mp)))                 # [Cin_p, Lx]

    # conv weight OIHW -> [Cout, kh*kw*Cin_p], rows ordered (dy, dx, cin) to match im2col.
    w2 = jnp.transpose(conv_w_oihw, (0, 2, 3, 1))                      # [Cout, kh, kw, Cin]
    w2 = jnp.pad(w2, ((0, 0), (0, 0), (0, 0), (0, Cin_p - Cin)))
    w2 = w2.reshape(Cout, K2).astype(compute_dtype)

    # per-channel arch/mask scale = sum_i alpha_i * mask_i (optionally dropping `lenth`'s term)
    aw = jnp.asarray(arch_weight, jnp.float32)
    if lenth is not None:
        assert lenth in supernet_channels
        keep = tuple(0.0 if i == supernet_channels.index(lenth) else 1.0
                     for i in range(len(supernet_channels)))
        aw = aw * jnp.asarray(keep, jnp.float32)
    ch = jnp.arange(Cout)
    ch_masks = (ch[None, :] < jnp.asarray(supernet_channels)[:, None]).astype(jnp.float32)
    scale = (aw[:, None] * ch_masks).sum(axis=0)                       # [Cout]

    shifts = tuple(dy * Wp + dx for dy in range(kh) for dx in range(kw))

    # ------------- pass 1: fused im2col MXU matmul + lane-wide BN statistics -------------
    def conv_stats_kernel(xa_ref, xh_ref, w_ref, y_ref, sum_ref, sq_ref, xw_ref, col_ref):
        o = pl.program_id(0)
        i = pl.program_id(1)

        @pl.when(i == 0)
        def _init():
            sum_ref[...] = jnp.zeros_like(sum_ref)
            sq_ref[...] = jnp.zeros_like(sq_ref)

        # this tile's lanes + the next 128-lane halo block (two lane-aligned stores)
        xw_ref[:, :tile_m] = xa_ref[...]
        xw_ref[:, tile_m:] = xh_ref[...]

        # in-kernel im2col: write the kh*kw shifted row-blocks straight into the scratch
        for k, s in enumerate(shifts):
            col_ref[k * Cin_p:(k + 1) * Cin_p, :] = xw_ref[:, s:s + tile_m]

        # one fused [Cout, kh*kw*Cin] @ [kh*kw*Cin, tile_m] matmul, f32 MXU accumulation
        acc = jnp.dot(w_ref[...], col_ref[...], preferred_element_type=jnp.float32)
        y_ref[...] = acc.astype(y_ref.dtype)                           # lane-dense store

        # validity mask computed in-kernel (division-free exact f32 modulo): drops the
        # padded border rows/cols and the alignment tail from the BN statistics.
        base = (o * n_half + i) * tile_m
        pos = (jax.lax.broadcasted_iota(jnp.int32, (1, tile_m), 1) + base
               ).astype(jnp.float32)

        def fmod(v, m):
            q = jnp.floor(v * (1.0 / m))
            r = v - q * m
            r = jnp.where(r >= m, r - m, r)
            return jnp.where(r < 0.0, r + m, r)

        valid = ((pos < float(Mp))
                 & (fmod(pos, float(Wp)) < float(W))
                 & (fmod(pos, float(Hp * Wp)) < float(H * Wp)))
        mask = valid.astype(jnp.float32)                               # [1, tile_m]

        masked = acc * mask
        # lane-wide partial stats: pure VPU adds over 128-lane slices; the final 128->1
        # cross-lane reduction happens once, host-side, instead of an XLU reduce per tile.
        s_part = jnp.zeros((Cout, 128), jnp.float32)
        q_part = jnp.zeros((Cout, 128), jnp.float32)
        for j in range(tile_m // 128):
            sl = slice(j * 128, (j + 1) * 128)
            s_part = s_part + masked[:, sl]
            q_part = q_part + masked[:, sl] * acc[:, sl]
        sum_ref[0] += s_part
        sq_ref[0] += q_part

    flops1 = 2 * Mp_pad * K2 * Cout
    bytes1 = (Cin_p * (Mp_pad + n_tiles * HALO) * compute_bytes        # activation + halo re-read
              + n_tiles * Cout * K2 * compute_bytes                    # weights (refetched)
              + Cout * Mp_pad * jnp.dtype(y_dtype).itemsize            # y writeback
              + 2 * 2 * Cout * 128 * 4)                                # stats
    cost1 = pl.CostEstimate(flops=int(flops1), transcendentals=0,
                            bytes_accessed=int(bytes1))

    y, s_sum, s_sq = pl.pallas_call(
        conv_stats_kernel,
        out_shape=(jax.ShapeDtypeStruct((Cout, Mp_pad), y_dtype),
                   jax.ShapeDtypeStruct((2, Cout, 128), jnp.float32),
                   jax.ShapeDtypeStruct((2, Cout, 128), jnp.float32)),
        grid_spec=pltpu.PrefetchScalarGridSpec(
            num_scalar_prefetch=0,
            grid=(2, n_half),                                          # (core-half, M tile)
            in_specs=[
                pl.BlockSpec((Cin_p, tile_m), lambda o, i: (0, o * n_half + i)),
                pl.BlockSpec((Cin_p, HALO),
                             lambda o, i: (0, (o * n_half + i + 1) * (tile_m // HALO))),
                pl.BlockSpec((Cout, K2), lambda o, i: (0, 0)),
            ],
            out_specs=[
                pl.BlockSpec((Cout, tile_m), lambda o, i: (0, o * n_half + i)),
                pl.BlockSpec((1, Cout, 128), lambda o, i: (o, 0, 0)),  # per-core partial sum
                pl.BlockSpec((1, Cout, 128), lambda o, i: (o, 0, 0)),  # per-core partial sumsq
            ],
            scratch_shapes=[
                pltpu.VMEM((Cin_p, tile_m + HALO), compute_dtype),     # activation window
                pltpu.VMEM((K2, tile_m), compute_dtype),               # im2col buffer
            ],
        ),
        compiler_params=pltpu.CompilerParams(
            dimension_semantics=("parallel", "arbitrary"),
            vmem_limit_bytes=vmem_limit),
        cost_estimate=cost1,
    )(xt, xt, w2)

    # ---- tiny per-channel BN math (batch stats, biased variance); fold arch/mask scale ----
    count = float(N * H * W)
    ch_sum = s_sum.sum(axis=(0, 2))                                    # [Cout]
    ch_sq = s_sq.sum(axis=(0, 2))
    mean = ch_sum / count
    var = ch_sq / count - mean * mean
    # TODO(synk): for much larger activations use a shifted sum/sumsq to avoid cancellation.
    a_vec = jax.lax.rsqrt(var + BN_EPS) * scale                        # inv_std * mixed mask
    b_vec = -mean * a_vec
    a = a_vec[:, None].astype(jnp.float32)                             # [Cout, 1]
    b = b_vec[:, None].astype(jnp.float32)

    # ------------- pass 2: per-channel affine (normalize + scale), parallel over M ----------
    def bn_scale_kernel(y_ref, a_ref, b_ref, o_ref):
        v = y_ref[...].astype(jnp.float32) * a_ref[...] + b_ref[...]
        if fuse_relu:
            v = jnp.maximum(v, 0.0)
        o_ref[...] = v.astype(o_ref.dtype)

    out_bytes = jnp.dtype(out_dtype).itemsize
    bytes2 = Cout * Mp_pad * (jnp.dtype(y_dtype).itemsize + out_bytes) + n_tiles * 2 * Cout * 4
    cost2 = pl.CostEstimate(flops=2 * Cout * Mp_pad, transcendentals=0,
                            bytes_accessed=int(bytes2))

    # alias the intermediate into the output when dtypes match (halves the peak footprint)
    io_alias = {0: 0} if jnp.dtype(y_dtype) == jnp.dtype(out_dtype) else {}

    out_t = pl.pallas_call(
        bn_scale_kernel,
        out_shape=jax.ShapeDtypeStruct((Cout, Mp_pad), out_dtype),
        grid_spec=pltpu.PrefetchScalarGridSpec(
            num_scalar_prefetch=0,
            grid=(n_tiles,),
            in_specs=[
                pl.BlockSpec((Cout, tile_m), lambda m: (0, m)),
                pl.BlockSpec((Cout, 1), lambda m: (0, 0)),
                pl.BlockSpec((Cout, 1), lambda m: (0, 0)),
            ],
            out_specs=pl.BlockSpec((Cout, tile_m), lambda m: (0, m)),
        ),
        compiler_params=pltpu.CompilerParams(
            dimension_semantics=("parallel",),
            vmem_limit_bytes=vmem_limit),
        cost_estimate=cost2,
        input_output_aliases=io_alias,
    )(y, a, b)

    # TODO(synk): a chained supernet ResNet should keep `out_t` in this channel-major
    # flattened-padded layout between layers (re-zeroing the border via the validity mask
    # in pass 2) instead of paying the transpose below for every layer.
    out = out_t[:, :Mp].reshape(Cout, N, Hp, Wp)[:, :, :H, :W]
    return jnp.transpose(out, (1, 0, 2, 3))


def _reference(x_nchw, conv_w_oihw, arch_weight, supernet_channels):
    """Pure-JAX reference mirroring the PyTorch MixChannelConvBN forward."""
    y = jax.lax.conv_general_dilated(
        x_nchw.astype(jnp.float32), conv_w_oihw.astype(jnp.float32),
        window_strides=(1, 1), padding=((1, 1), (1, 1)),
        dimension_numbers=("NCHW", "OIHW", "NCHW"))
    mean = y.mean(axis=(0, 2, 3), keepdims=True)
    var = ((y - mean) ** 2).mean(axis=(0, 2, 3), keepdims=True)
    yn = (y - mean) * jax.lax.rsqrt(var + BN_EPS)
    Cout = y.shape[1]
    ch_masks = (jnp.arange(Cout)[None, :]
                < jnp.asarray(supernet_channels)[:, None]).astype(jnp.float32)
    mixed = (jnp.asarray(arch_weight, jnp.float32)[:, None] * ch_masks).sum(axis=0)
    return yn * mixed[None, :, None, None]


if __name__ == "__main__":
    # layer_id = 0 of the supernet: SuperNetSetting[0] = [4, 8, 12, 16], out_planes = 16
    N, Cin, H, W = 2, 4, 16, 16
    Cout, kh, kw = 16, 3, 3

    key = jax.random.PRNGKey(0)
    kx, kwk = jax.random.split(key)
    x = jax.random.normal(kx, (N, Cin, H, W), dtype=jnp.float32)
    conv_w = 0.1 * jax.random.normal(kwk, (Cout, Cin, kh, kw), dtype=jnp.float32)
    arch_weight = jnp.array([0.1, 0.0, 0.4, 0.5], dtype=jnp.float32)

    # default bf16 MXU path (bf16 intermediate, f32 stats/output)
    out_bf16 = jax.block_until_ready(mix_channel_conv_bn(x, conv_w, arch_weight))
    # full-f32 path (also exercises pass-2 input_output_aliases since y.dtype == out.dtype)
    out_f32 = jax.block_until_ready(
        mix_channel_conv_bn(x, conv_w, arch_weight, compute_dtype=jnp.float32))

    ref = _reference(x, conv_w, arch_weight, SUPERNET_CHANNELS)

    assert out_bf16.shape == (N, Cout, H, W)
    assert out_bf16.dtype == jnp.float32
    # f32 pipeline should match the reference tightly ...
    assert jnp.allclose(out_f32, ref, atol=2e-3, rtol=2e-3)
    # ... and the bf16 input / intermediate rounding stays small.
    assert jnp.allclose(out_bf16, ref, atol=8e-2, rtol=8e-2)
    print("KERNEL_OK")
</pallas_src>

<mosaic_0001>
module attributes {stable_mosaic.version = 11 : i64} {
  func.func @conv_stats_kernel(%arg0: i32, %arg1: i32, %arg2: memref<4x384xbf16, #tpu.memory_space<vmem>>, %arg3: memref<4x128xbf16, #tpu.memory_space<vmem>>, %arg4: memref<16x36xbf16, #tpu.memory_space<vmem>>, %arg5: memref<16x384xbf16, #tpu.memory_space<vmem>>, %arg6: memref<1x16x128xf32, #tpu.memory_space<vmem>>, %arg7: memref<1x16x128xf32, #tpu.memory_space<vmem>>, %arg8: memref<4x512xbf16, #tpu.memory_space<vmem>>, %arg9: memref<36x384xbf16, #tpu.memory_space<vmem>>) attributes {dimension_semantics = [#tpu.dimension_semantics<parallel>, #tpu.dimension_semantics<arbitrary>], iteration_bounds = array<i64: 2, 1>, scalar_prefetch = 0 : i64, scratch_operands = 2 : i64, tpu.core_type = #tpu.core_type<tc>, window_params = [{transform_indices = @transform_0, window_bounds = array<i64: 4, 384>}, {transform_indices = @transform_1, window_bounds = array<i64: 4, 128>}, {pipeline_mode = #tpu.pipeline_mode<synchronous>, transform_indices = @transform_2, window_bounds = array<i64: 16, 36>}, {transform_indices = @transform_3, window_bounds = array<i64: 16, 384>}, {transform_indices = @transform_4, window_bounds = array<i64: 1, 16, 128>}, {transform_indices = @transform_5, window_bounds = array<i64: 1, 16, 128>}]} {
    %c0_i32 = arith.constant 0 : i32
    %0 = arith.cmpi eq, %arg1, %c0_i32 : i32
    %1 = arith.extui %0 : i1 to i32
    %c0_i32_0 = arith.constant 0 : i32
    %2 = arith.cmpi ne, %1, %c0_i32_0 : i32
    scf.if %2 {
      %cst_63 = arith.constant 0.000000e+00 : f32
      %113 = vector.broadcast %cst_63 : f32 to vector<1x16x128xf32>
      %c0_64 = arith.constant 0 : index
      %c0_65 = arith.constant 0 : index
      %c0_66 = arith.constant 0 : index
      %114 = vector.load %arg6[%c0_64, %c0_65, %c0_66] : memref<1x16x128xf32, #tpu.memory_space<vmem>>, vector<1x16x128xf32>
      tpu.vector_store %arg6[%c0_64, %c0_65, %c0_66], %113 {strides = array<i32>} : memref<1x16x128xf32, #tpu.memory_space<vmem>>, vector<1x16x128xf32>,
      %cst_67 = arith.constant 0.000000e+00 : f32
      %115 = vector.broadcast %cst_67 : f32 to vector<1x16x128xf32>
      %c0_68 = arith.constant 0 : index
      %c0_69 = arith.constant 0 : index
      %c0_70 = arith.constant 0 : index
      %116 = vector.load %arg7[%c0_68, %c0_69, %c0_70] : memref<1x16x128xf32, #tpu.memory_space<vmem>>, vector<1x16x128xf32>
      tpu.vector_store %arg7[%c0_68, %c0_69, %c0_70], %115 {strides = array<i32>} : memref<1x16x128xf32, #tpu.memory_space<vmem>>, vector<1x16x128xf32>,
    } else {
    }
    %c0 = arith.constant 0 : index
    %c0_1 = arith.constant 0 : index
    %3 = vector.load %arg2[%c0, %c0_1] : memref<4x384xbf16, #tpu.memory_space<vmem>>, vector<4x384xbf16>
    %c0_2 = arith.constant 0 : index
    %c0_3 = arith.constant 0 : index
    %4 = vector.load %arg8[%c0_2, %c0_3] : memref<4x512xbf16, #tpu.memory_space<vmem>>, vector<4x384xbf16>
    tpu.vector_store %arg8[%c0_2, %c0_3], %3 {strides = array<i32>} : memref<4x512xbf16, #tpu.memory_space<vmem>>, vector<4x384xbf16>,
    %c0_4 = arith.constant 0 : index
    %c0_5 = arith.constant 0 : index
    %5 = vector.load %arg3[%c0_4, %c0_5] : memref<4x128xbf16, #tpu.memory_space<vmem>>, vector<4x128xbf16>
    %c0_6 = arith.constant 0 : index
    %c384 = arith.constant 384 : index
    %6 = vector.load %arg8[%c0_6, %c384] : memref<4x512xbf16, #tpu.memory_space<vmem>>, vector<4x128xbf16>
    tpu.vector_store %arg8[%c0_6, %c384], %5 {strides = array<i32>} : memref<4x512xbf16, #tpu.memory_space<vmem>>, vector<4x128xbf16>,
    %c0_7 = arith.constant 0 : index
    %c0_8 = arith.constant 0 : index
    %7 = vector.load %arg8[%c0_7, %c0_8] : memref<4x512xbf16, #tpu.memory_space<vmem>>, vector<4x384xbf16>
    %c0_9 = arith.constant 0 : index
    %c0_10 = arith.constant 0 : index
    %8 = vector.load %arg9[%c0_9, %c0_10] : memref<36x384xbf16, #tpu.memory_space<vmem>>, vector<4x384xbf16>
    tpu.vector_store %arg9[%c0_9, %c0_10], %7 {strides = array<i32>} : memref<36x384xbf16, #tpu.memory_space<vmem>>, vector<4x384xbf16>,
    %c0_11 = arith.constant 0 : index
    %c1 = arith.constant 1 : index
    %9 = vector.load %arg8[%c0_11, %c1] : memref<4x512xbf16, #tpu.memory_space<vmem>>, vector<4x384xbf16>
    %c4 = arith.constant 4 : index
    %c0_12 = arith.constant 0 : index
    %10 = vector.load %arg9[%c4, %c0_12] : memref<36x384xbf16, #tpu.memory_space<vmem>>, vector<4x384xbf16>
    tpu.vector_store %arg9[%c4, %c0_12], %9 {strides = array<i32>} : memref<36x384xbf16, #tpu.memory_space<vmem>>, vector<4x384xbf16>,
    %c0_13 = arith.constant 0 : index
    %c2 = arith.constant 2 : index
    %11 = vector.load %arg8[%c0_13, %c2] : memref<4x512xbf16, #tpu.memory_space<vmem>>, vector<4x384xbf16>
    %c8 = arith.constant 8 : index
    %c0_14 = arith.constant 0 : index
    %12 = vector.load %arg9[%c8, %c0_14] : memref<36x384xbf16, #tpu.memory_space<vmem>>, vector<4x384xbf16>
    tpu.vector_store %arg9[%c8, %c0_14], %11 {strides = array<i32>} : memref<36x384xbf16, #tpu.memory_space<vmem>>, vector<4x384xbf16>,
    %c0_15 = arith.constant 0 : index
    %c18 = arith.constant 18 : index
    %13 = vector.load %arg8[%c0_15, %c18] : memref<4x512xbf16, #tpu.memory_space<vmem>>, vector<4x384xbf16>
    %c12 = arith.constant 12 : index
    %c0_16 = arith.constant 0 : index
    %14 = vector.load %arg9[%c12, %c0_16] : memref<36x384xbf16, #tpu.memory_space<vmem>>, vector<4x384xbf16>
    tpu.vector_store %arg9[%c12, %c0_16], %13 {strides = array<i32>} : memref<36x384xbf16, #tpu.memory_space<vmem>>, vector<4x384xbf16>,
    %c0_17 = arith.constant 0 : index
    %c19 = arith.constant 19 : index
    %15 = vector.load %arg8[%c0_17, %c19] : memref<4x512xbf16, #tpu.memory_space<vmem>>, vector<4x384xbf16>
    %c16 = arith.constant 16 : index
    %c0_18 = arith.constant 0 : index
    %16 = vector.load %arg9[%c16, %c0_18] : memref<36x384xbf16, #tpu.memory_space<vmem>>, vector<4x384xbf16>
    tpu.vector_store %arg9[%c16, %c0_18], %15 {strides = array<i32>} : memref<36x384xbf16, #tpu.memory_space<vmem>>, vector<4x384xbf16>,
    %c0_19 = arith.constant 0 : index
    %c20 = arith.constant 20 : index
    %17 = vector.load %arg8[%c0_19, %c20] : memref<4x512xbf16, #tpu.memory_space<vmem>>, vector<4x384xbf16>
    %c20_20 = arith.constant 20 : index
    %c0_21 = arith.constant 0 : index
    %18 = vector.load %arg9[%c20_20, %c0_21] : memref<36x384xbf16, #tpu.memory_space<vmem>>, vector<4x384xbf16>
    tpu.vector_store %arg9[%c20_20, %c0_21], %17 {strides = array<i32>} : memref<36x384xbf16, #tpu.memory_space<vmem>>, vector<4x384xbf16>,
    %c0_22 = arith.constant 0 : index
    %c36 = arith.constant 36 : index
    %19 = vector.load %arg8[%c0_22, %c36] : memref<4x512xbf16, #tpu.memory_space<vmem>>, vector<4x384xbf16>
    %c24 = arith.constant 24 : index
    %c0_23 = arith.constant 0 : index
    %20 = vector.load %arg9[%c24, %c0_23] : memref<36x384xbf16, #tpu.memory_space<vmem>>, vector<4x384xbf16>
    tpu.vector_store %arg9[%c24, %c0_23], %19 {strides = array<i32>} : memref<36x384xbf16, #tpu.memory_space<vmem>>, vector<4x384xbf16>,
    %c0_24 = arith.constant 0 : index
    %c37 = arith.constant 37 : index
    %21 = vector.load %arg8[%c0_24, %c37] : memref<4x512xbf16, #tpu.memory_space<vmem>>, vector<4x384xbf16>
    %c28 = arith.constant 28 : index
    %c0_25 = arith.constant 0 : index
    %22 = vector.load %arg9[%c28, %c0_25] : memref<36x384xbf16, #tpu.memory_space<vmem>>, vector<4x384xbf16>
    tpu.vector_store %arg9[%c28, %c0_25], %21 {strides = array<i32>} : memref<36x384xbf16, #tpu.memory_space<vmem>>, vector<4x384xbf16>,
    %c0_26 = arith.constant 0 : index
    %c38 = arith.constant 38 : index
    %23 = vector.load %arg8[%c0_26, %c38] : memref<4x512xbf16, #tpu.memory_space<vmem>>, vector<4x384xbf16>
    %c32 = arith.constant 32 : index
    %c0_27 = arith.constant 0 : index
    %24 = vector.load %arg9[%c32, %c0_27] : memref<36x384xbf16, #tpu.memory_space<vmem>>, vector<4x384xbf16>
    tpu.vector_store %arg9[%c32, %c0_27], %23 {strides = array<i32>} : memref<36x384xbf16, #tpu.memory_space<vmem>>, vector<4x384xbf16>,
    %c0_28 = arith.constant 0 : index
    %c0_29 = arith.constant 0 : index
    %25 = vector.load %arg4[%c0_28, %c0_29] : memref<16x36xbf16, #tpu.memory_space<vmem>>, vector<16x36xbf16>
    %c0_30 = arith.constant 0 : index
    %c0_31 = arith.constant 0 : index
    %26 = vector.load %arg9[%c0_30, %c0_31] : memref<36x384xbf16, #tpu.memory_space<vmem>>, vector<36x384xbf16>
    %cst = arith.constant dense<0.000000e+00> : vector<16x384xf32>
    %27 = tpu.matmul %25, %26, %cst {dimension_numbers = #tpu.dot_dimension_numbers<[1], [0], [0], [1], [0, 0, 1, 1], [], []>} : vector<16x36xbf16>, vector<36x384xbf16>, vector<16x384xf32> -> vector<16x384xf32>
    %28 = arith.truncf %27 : vector<16x384xf32> to vector<16x384xbf16>
    %c0_32 = arith.constant 0 : index
    %c0_33 = arith.constant 0 : index
    %29 = vector.load %arg5[%c0_32, %c0_33] : memref<16x384xbf16, #tpu.memory_space<vmem>>, vector<16x384xbf16>
    tpu.vector_store %arg5[%c0_32, %c0_33], %28 {strides = array<i32>} : memref<16x384xbf16, #tpu.memory_space<vmem>>, vector<16x384xbf16>,
    %c1_i32 = arith.constant 1 : i32
    %30 = arith.muli %arg0, %c1_i32 : i32
    %31 = arith.addi %30, %arg1 : i32
    %c384_i32 = arith.constant 384 : i32
    %32 = arith.muli %31, %c384_i32 : i32
    %33 = tpu.iota {dimensions = array<i32: 1>} : vector<1x384xi32>
    %34 = vector.broadcast %32 : i32 to vector<1x384xi32>
    %35 = arith.addi %33, %34 : vector<1x384xi32>
    %36 = arith.sitofp %35 : vector<1x384xi32> to vector<1x384xf32>
    %cst_34 = arith.constant 6.480000e+02 : f32
    %37 = vector.broadcast %cst_34 : f32 to vector<1x384xf32>
    %38 = arith.cmpf olt, %36, %37 : vector<1x384xf32>
    %cst_35 = arith.constant 0.055555556 : f32
    %39 = vector.broadcast %cst_35 : f32 to vector<1x384xf32>
    %40 = arith.mulf %36, %39 : vector<1x384xf32>
    %41 = math.floor %40 : vector<1x384xf32>
    %cst_36 = arith.constant 1.800000e+01 : f32
    %42 = vector.broadcast %cst_36 : f32 to vector<1x384xf32>
    %43 = arith.mulf %41, %42 : vector<1x384xf32>
    %44 = arith.subf %36, %43 : vector<1x384xf32>
    %cst_37 = arith.constant 1.800000e+01 : f32
    %45 = vector.broadcast %cst_37 : f32 to vector<1x384xf32>
    %46 = arith.cmpf oge, %44, %45 : vector<1x384xf32>
    %cst_38 = arith.constant 1.800000e+01 : f32
    %47 = vector.broadcast %cst_38 : f32 to vector<1x384xf32>
    %48 = arith.subf %44, %47 : vector<1x384xf32>
    %49 = arith.select %46, %48, %44 : vector<1x384xi1>, vector<1x384xf32>
    %cst_39 = arith.constant 0.000000e+00 : f32
    %50 = vector.broadcast %cst_39 : f32 to vector<1x384xf32>
    %51 = arith.cmpf olt, %49, %50 : vector<1x384xf32>
    %cst_40 = arith.constant 1.800000e+01 : f32
    %52 = vector.broadcast %cst_40 : f32 to vector<1x384xf32>
    %53 = arith.addf %49, %52 : vector<1x384xf32>
    %54 = arith.select %51, %53, %49 : vector<1x384xi1>, vector<1x384xf32>
    %cst_41 = arith.constant 1.600000e+01 : f32
    %55 = vector.broadcast %cst_41 : f32 to vector<1x384xf32>
    %56 = arith.cmpf olt, %54, %55 : vector<1x384xf32>
    %57 = arith.andi %38, %56 : vector<1x384xi1>
    %cst_42 = arith.constant 0.00308641978 : f32
    %58 = vector.broadcast %cst_42 : f32 to vector<1x384xf32>
    %59 = arith.mulf %36, %58 : vector<1x384xf32>
    %60 = math.floor %59 : vector<1x384xf32>
    %cst_43 = arith.constant 3.240000e+02 : f32
    %61 = vector.broadcast %cst_43 : f32 to vector<1x384xf32>
    %62 = arith.mulf %60, %61 : vector<1x384xf32>
    %63 = arith.subf %36, %62 : vector<1x384xf32>
    %cst_44 = arith.constant 3.240000e+02 : f32
    %64 = vector.broadcast %cst_44 : f32 to vector<1x384xf32>
    %65 = arith.cmpf oge, %63, %64 : vector<1x384xf32>
    %cst_45 = arith.constant 3.240000e+02 : f32
    %66 = vector.broadcast %cst_45 : f32 to vector<1x384xf32>
    %67 = arith.subf %63, %66 : vector<1x384xf32>
    %68 = arith.select %65, %67, %63 : vector<1x384xi1>, vector<1x384xf32>
    %cst_46 = arith.constant 0.000000e+00 : f32
    %69 = vector.broadcast %cst_46 : f32 to vector<1x384xf32>
    %70 = arith.cmpf olt, %68, %69 : vector<1x384xf32>
    %cst_47 = arith.constant 3.240000e+02 : f32
    %71 = vector.broadcast %cst_47 : f32 to vector<1x384xf32>
    %72 = arith.addf %68, %71 : vector<1x384xf32>
    %73 = arith.select %70, %72, %68 : vector<1x384xi1>, vector<1x384xf32>
    %cst_48 = arith.constant 2.880000e+02 : f32
    %74 = vector.broadcast %cst_48 : f32 to vector<1x384xf32>
    %75 = arith.cmpf olt, %73, %74 : vector<1x384xf32>
    %76 = arith.andi %57, %75 : vector<1x384xi1>
    %77 = arith.extui %76 : vector<1x384xi1> to vector<1x384xi32>
    %78 = arith.sitofp %77 : vector<1x384xi32> to vector<1x384xf32>
    %79 = vector.broadcast %78 : vector<1x384xf32> to vector<16x384xf32>
    %80 = arith.mulf %27, %79 : vector<16x384xf32>
    %cst_49 = arith.constant 0.000000e+00 : f32
    %81 = vector.broadcast %cst_49 : f32 to vector<16x128xf32>
    %cst_50 = arith.constant 0.000000e+00 : f32
    %82 = vector.broadcast %cst_50 : f32 to vector<16x128xf32>
    %83 = vector.extract_strided_slice %80 {offsets = [0, 0], sizes = [16, 128], strides = [1, 1]} : vector<16x384xf32> to vector<16x128xf32>
    %84 = arith.addf %81, %83 : vector<16x128xf32>
    %85 = vector.extract_strided_slice %80 {offsets = [0, 0], sizes = [16, 128], strides = [1, 1]} : vector<16x384xf32> to vector<16x128xf32>
    %86 = vector.extract_strided_slice %27 {offsets = [0, 0], sizes = [16, 128], strides = [1, 1]} : vector<16x384xf32> to vector<16x128xf32>
    %87 = arith.mulf %85, %86 : vector<16x128xf32>
    %88 = arith.addf %82, %87 : vector<16x128xf32>
    %89 = vector.extract_strided_slice %80 {offsets = [0, 128], sizes = [16, 128], strides = [1, 1]} : vector<16x384xf32> to vector<16x128xf32>
    %90 = arith.addf %84, %89 : vector<16x128xf32>
    %91 = vector.extract_strided_slice %80 {offsets = [0, 128], sizes = [16, 128], strides = [1, 1]} : vector<16x384xf32> to vector<16x128xf32>
    %92 = vector.extract_strided_slice %27 {offsets = [0, 128], sizes = [16, 128], strides = [1, 1]} : vector<16x384xf32> to vector<16x128xf32>
    %93 = arith.mulf %91, %92 : vector<16x128xf32>
    %94 = arith.addf %88, %93 : vector<16x128xf32>
    %95 = vector.extract_strided_slice %80 {offsets = [0, 256], sizes = [16, 128], strides = [1, 1]} : vector<16x384xf32> to vector<16x128xf32>
    %96 = arith.addf %90, %95 : vector<16x128xf32>
    %97 = vector.extract_strided_slice %80 {offsets = [0, 256], sizes = [16, 128], strides = [1, 1]} : vector<16x384xf32> to vector<16x128xf32>
    %98 = vector.extract_strided_slice %27 {offsets = [0, 256], sizes = [16, 128], strides = [1, 1]} : vector<16x384xf32> to vector<16x128xf32>
    %99 = arith.mulf %97, %98 : vector<16x128xf32>
    %100 = arith.addf %94, %99 : vector<16x128xf32>
    %c0_51 = arith.constant 0 : index
    %c0_52 = arith.constant 0 : index
    %c0_53 = arith.constant 0 : index
    %101 = vector.load %arg6[%c0_51, %c0_52, %c0_53] : memref<1x16x128xf32, #tpu.memory_space<vmem>>, vector<1x16x128xf32>
    %102 = vector.shape_cast %101 : vector<1x16x128xf32> to vector<16x128xf32>
    %103 = arith.addf %102, %96 : vector<16x128xf32>
    %c0_54 = arith.constant 0 : index
    %c0_55 = arith.constant 0 : index
    %c0_56 = arith.constant 0 : index
    %104 = vector.load %arg6[%c0_54, %c0_55, %c0_56] : memref<1x16x128xf32, #tpu.memory_space<vmem>>, vector<1x16x128xf32>
    %105 = vector.shape_cast %104 : vector<1x16x128xf32> to vector<16x128xf32>
    %106 = vector.shape_cast %103 : vector<16x128xf32> to vector<1x16x128xf32>
    tpu.vector_store %arg6[%c0_54, %c0_55, %c0_56], %106 {strides = array<i32>} : memref<1x16x128xf32, #tpu.memory_space<vmem>>, vector<1x16x128xf32>,
    %c0_57 = arith.constant 0 : index
    %c0_58 = arith.constant 0 : index
    %c0_59 = arith.constant 0 : index
    %107 = vector.load %arg7[%c0_57, %c0_58, %c0_59] : memref<1x16x128xf32, #tpu.memory_space<vmem>>, vector<1x16x128xf32>
    %108 = vector.shape_cast %107 : vector<1x16x128xf32> to vector<16x128xf32>
    %109 = arith.addf %108, %100 : vector<16x128xf32>
    %c0_60 = arith.constant 0 : index
    %c0_61 = arith.constant 0 : index
    %c0_62 = arith.constant 0 : index
    %110 = vector.load %arg7[%c0_60, %c0_61, %c0_62] : memref<1x16x128xf32, #tpu.memory_space<vmem>>, vector<1x16x128xf32>
    %111 = vector.shape_cast %110 : vector<1x16x128xf32> to vector<16x128xf32>
    %112 = vector.shape_cast %109 : vector<16x128xf32> to vector<1x16x128xf32>
    tpu.vector_store %arg7[%c0_60, %c0_61, %c0_62], %112 {strides = array<i32>} : memref<1x16x128xf32, #tpu.memory_space<vmem>>, vector<1x16x128xf32>,
    return
  }
  func.func @transform_0(%arg0: i32, %arg1: i32) -> (i32, i32) {
    %c1_i32 = arith.constant 1 : i32
    %0 = arith.muli %arg0, %c1_i32 : i32
    %1 = arith.addi %0, %arg1 : i32
    %c0_i32 = arith.constant 0 : i32
    %c0_i32_0 = arith.constant 0 : i32
    return %c0_i32, %1 : i32, i32
  }
  func.func @transform_1(%arg0: i32, %arg1: i32) -> (i32, i32) {
    %c1_i32 = arith.constant 1 : i32
    %0 = arith.muli %arg0, %c1_i32 : i32
    %1 = arith.addi %0, %arg1 : i32
    %c1_i32_0 = arith.constant 1 : i32
    %2 = arith.addi %1, %c1_i32_0 : i32
    %c3_i32 = arith.constant 3 : i32
    %3 = arith.muli %2, %c3_i32 : i32
    %c0_i32 = arith.constant 0 : i32
    %c0_i32_1 = arith.constant 0 : i32
    return %c0_i32, %3 : i32, i32
  }
  func.func @transform_2(%arg0: i32, %arg1: i32) -> (i32, i32) {
    %c0_i32 = arith.constant 0 : i32
    %c0_i32_0 = arith.constant 0 : i32
    %c0_i32_1 = arith.constant 0 : i32
    return %c0_i32, %c0_i32_0 : i32, i32
  }
  func.func @transform_3(%arg0: i32, %arg1: i32) -> (i32, i32) {
    %c1_i32 = arith.constant 1 : i32
    %0 = arith.muli %arg0, %c1_i32 : i32
    %1 = arith.addi %0, %arg1 : i32
    %c0_i32 = arith.constant 0 : i32
    %c0_i32_0 = arith.constant 0 : i32
    return %c0_i32, %1 : i32, i32
  }
  func.func @transform_4(%arg0: i32, %arg1: i32) -> (i32, i32, i32) {
    %c0_i32 = arith.constant 0 : i32
    %c0_i32_0 = arith.constant 0 : i32
    %c0_i32_1 = arith.constant 0 : i32
    return %arg0, %c0_i32, %c0_i32_0 : i32, i32, i32
  }
  func.func @transform_5(%arg0: i32, %arg1: i32) -> (i32, i32, i32) {
    %c0_i32 = arith.constant 0 : i32
    %c0_i32_0 = arith.constant 0 : i32
    %c0_i32_1 = arith.constant 0 : i32
    return %arg0, %c0_i32, %c0_i32_0 : i32, i32, i32
  }
}

module attributes {stable_mosaic.version = 11 : i64} {
  func.func @bn_scale_kernel(%arg0: i32, %arg1: memref<16x384xbf16, #tpu.memory_space<vmem>>, %arg2: memref<16x1xf32, #tpu.memory_space<vmem>>, %arg3: memref<16x1xf32, #tpu.memory_space<vmem>>, %arg4: memref<16x384xf32, #tpu.memory_space<vmem>>) attributes {dimension_semantics = [#tpu.dimension_semantics<parallel>], iteration_bounds = array<i64: 2>, scalar_prefetch = 0 : i64, scratch_operands = 0 : i64, tpu.core_type = #tpu.core_type<tc>, window_params = [{transform_indices = @transform_0, window_bounds = array<i64: 16, 384>}, {pipeline_mode = #tpu.pipeline_mode<synchronous>, transform_indices = @transform_1, window_bounds = array<i64: 16, 1>}, {pipeline_mode = #tpu.pipeline_mode<synchronous>, transform_indices = @transform_2, window_bounds = array<i64: 16, 1>}, {transform_indices = @transform_3, window_bounds = array<i64: 16, 384>}]} {
    %c0 = arith.constant 0 : index
    %c0_0 = arith.constant 0 : index
    %0 = vector.load %arg1[%c0, %c0_0] : memref<16x384xbf16, #tpu.memory_space<vmem>>, vector<16x384xbf16>
    %1 = arith.extf %0 : vector<16x384xbf16> to vector<16x384xf32>
    %c0_1 = arith.constant 0 : index
    %c0_2 = arith.constant 0 : index
    %2 = vector.load %arg2[%c0_1, %c0_2] : memref<16x1xf32, #tpu.memory_space<vmem>>, vector<16x1xf32>
    %3 = vector.broadcast %2 : vector<16x1xf32> to vector<16x384xf32>
    %4 = arith.mulf %1, %3 : vector<16x384xf32>
    %c0_3 = arith.constant 0 : index
    %c0_4 = arith.constant 0 : index
    %5 = vector.load %arg3[%c0_3, %c0_4] : memref<16x1xf32, #tpu.memory_space<vmem>>, vector<16x1xf32>
    %6 = vector.broadcast %5 : vector<16x1xf32> to vector<16x384xf32>
    %7 = arith.addf %4, %6 : vector<16x384xf32>
    %c0_5 = arith.constant 0 : index
    %c0_6 = arith.constant 0 : index
    %8 = vector.load %arg4[%c0_5, %c0_6] : memref<16x384xf32, #tpu.memory_space<vmem>>, vector<16x384xf32>
    tpu.vector_store %arg4[%c0_5, %c0_6], %7 {strides = array<i32>} : memref<16x384xf32, #tpu.memory_space<vmem>>, vector<16x384xf32>,
    return
  }
  func.func @transform_0(%arg0: i32) -> (i32, i32) {
    %c0_i32 = arith.constant 0 : i32
    %c0_i32_0 = arith.constant 0 : i32
    return %c0_i32, %arg0 : i32, i32
  }
  func.func @transform_1(%arg0: i32) -> (i32, i32) {
    %c0_i32 = arith.constant 0 : i32
    %c0_i32_0 = arith.constant 0 : i32
    %c0_i32_1 = arith.constant 0 : i32
    return %c0_i32, %c0_i32_0 : i32, i32
  }
  func.func @transform_2(%arg0: i32) -> (i32, i32) {
    %c0_i32 = arith.constant 0 : i32
    %c0_i32_0 = arith.constant 0 : i32
    %c0_i32_1 = arith.constant 0 : i32
    return %c0_i32, %c0_i32_0 : i32, i32
  }
  func.func @transform_3(%arg0: i32) -> (i32, i32) {
    %c0_i32 = arith.constant 0 : i32
    %c0_i32_0 = arith.constant 0 : i32
    return %c0_i32, %arg0 : i32, i32
  }
}

</mosaic_0001>

<bundles_post_ra>
// kernel: mix_channel_conv_bn.3
= control target key start
LH: loop header
LB: loop body
LE: loop exit
PB: predicated region body
PF: predicated region fallthrough
CT: control target
= control target key end

     0   :  { %s442_s12 = smov 0   ;;  %s444_s13 = smov 0   ;;  %s514_s0 = inlined_call_operand.vmem [shape: bf16[16,768], index: 0, kind: input, shape index: {}]   ;;  %s515_s1 = inlined_call_operand.vmem [shape: f32[16,1], index: 1, kind: input, shape index: {}]   ;;  %s516_s2 = inlined_call_operand.vmem [shape: f32[16,1], index: 2, kind: input, shape index: {}]   ;;  %s517_s3 = inlined_call_operand.vmem [shape: f32[16,768], index: 3, kind: output, shape index: {}]  }
   0x1   :  { %s446_s14 = smov 0  }
   0x2 LB: > { %s352_s15 = sadd.s32 4294967295, %s419_s14   ;;  %s459_s16 = sadd.s32 1, %s419_s14   ;;  %s419_s14 = sphi %s446_s14, %s521_s14   ;;  %s415_s13 = sphi %s444_s13, %s520_s13   ;;  %s411_s12 = sphi %s442_s12, %s519_s12  }
   0x3   : > { %s17_s17 = ssub.s32 %s419_s14, %s459_s16  ;;  %s20_s18 = sadd.s32 1, %s415_s13 }
   0x4   : > { %p18_p0 = scmp.eq.s32.totalorder %s17_s17, 0  ;;  %p27_p1 = scmp.ne.s32.totalorder %s415_s13, %s411_s12 }
   0x5   : > { %p28_p2 = scmp.eq.s32.totalorder %s419_s14, 0  ;;  %p99_p3 = scmp.eq.s32.totalorder %s352_s15, 1 }
   0x6   : > { %s470_s19 = scalar_select %p18_p0, %s415_s13, %s20_s18  }
   0x7   : > { %p29_p4 = por %p28_p2, %p27_p1  ;;  %p472_p5 = por %p99_p3, %p27_p1 }
   0x8   : > { %p355_p6 = scmp.ge.s32.totalorder %s419_s14, 2 }
   0xa   : > { %127 = sbr.rel (%p355_p6) target bundleno = 24 (0x18), region = 24 }
   0xf   : > { %130 = sbr.rel (!%p29_p4) target bundleno = 24 (0x18), region = 28  ;;  %s132_s21 = sand.u32 (%p29_p4), 1, %s415_s13  }
  0x10   : > { %s365_s22 = smul.u32 (%p29_p4), 12, %s419_s14 }
  0x11   : > { %s367_s23 = smul.u32 (%p29_p4), 24, %s132_s21 }
  0x12   : > { %s137_s26 = scalar_lea.vmem (%p29_p4), %s514_s0, %s365_s22 }
  0x13   : > { %v152_v0 = vld [vmem:[%s137_s26] sm:$0xff] (%p29_p4)  ;;  %v154_v1 = vld [vmem:[%s137_s26 + $0x18] sm:$0xff] (%p29_p4)  ;;  %v357_v2 = vld [vmem:[%s137_s26 + $0x8] sm:$0xf] (%p29_p4)  ;;  %s134_s27 = scalar_lea.vmem (%p29_p4), [#allocation2], %s367_s23 }
  0x14   : > { %153 = vst [vmem:[%s134_s27] sm:$0xff] %v152_v0  ;;  %v359_v3 = vld [vmem:[%s137_s26 + $0x20] sm:$0xf] }
  0x15   : > { %155 = vst [vmem:[%s134_s27 + $0xc] sm:$0xff] %v154_v1 }
  0x16   : > { %358 = vst [vmem:[%s134_s27 + $0x8] sm:$0xf] %v357_v2 }
  0x17   : > { %360 = vst [vmem:[%s134_s27 + $0x14] sm:$0xf] %v359_v3 }
  0x18 PF: > { %p361_p7 = scmp.ge.s32.totalorder %s419_s14, 1  ;;  %p172_p8 = scmp.lt.s32.totalorder %s419_s14, 3 }
  0x1a   : > { %p173_p9 = pnand %p361_p7, %p172_p8 }
  0x1b   : > { %s179_s9 = sand.u32 (!%p173_p9), 1, %s411_s12  }
  0x1c   : > { %176 = sbr.rel (%p173_p9) target bundleno = 173 (0xad), region = 54 }
  0x1d   : > { %s368_s10 = smul.u32 (!%p173_p9), 24, %s179_s9 }
  0x1e   : > { %s369_s17 = smul.u32 (!%p173_p9), 48, %s179_s9 }
  0x1f   : > { %s181_s11 = scalar_lea.vmem (!%p173_p9), [#allocation2], %s368_s10 }
  0x20   : > { %s200_s18 = scalar_lea.vmem (!%p173_p9), [#allocation3], %s369_s17 }
  0x21   : > { %v231_v4 = vld [vmem:[%s516_s2] sm:$0xff]  ;;  %v421_v6 = vmov 0   ;;  %v232_v7 = vld [vmem:[%s516_s2 + $0x8] sm:$0xff]  ;;  %s366_s12 = smul.u32 (%p472_p5), 24, %s352_s15 }
  0x22   : > { %v213_v5 = vld [vmem:[%s515_s1] sm:$0xff]  ;;  %396 = vset.pattern.permute.xlu1 %v421_v6  ;;  %395 = vset.pattern.permute.xlu0 %v421_v6  ;;  %v214_v8 = vld [vmem:[%s515_s1 + $0x8] sm:$0xff] }
  0x23   : > { %235 = vperm.xlu1 %396, %v231_v4   ;;  %217 = vperm.xlu0 %395, %v213_v5   ;;  %v203_v9 = vld [vmem:[%s181_s11] sm:$0xff]  ;;  %v204_v10 = vld [vmem:[%s181_s11 + $0x8] sm:$0xf]  ;;  %v205_v19 = vld [vmem:[%s181_s11 + $0xc] sm:$0xff]  ;;  %s264_s23 = scalar_lea.vmem (%p472_p5), %s517_s3, %s366_s12 }
  0x24   : > { %v207_v11 = vunpack.c.l.bf16 %v203_v9  ;;  %v208_v12 = vunpack.c.h.bf16 %v203_v9  ;;  %v209_v13 = vunpack.c.l.bf16 %v204_v10  ;;  %v206_v20 = vld [vmem:[%s181_s11 + $0x14] sm:$0xf]  ;;  %v210_v24 = vunpack.c.l.bf16 %v205_v19 }
  0x25   : > { %v211_v25 = vunpack.c.h.bf16 %v205_v19  ;;  %v212_v26 = vunpack.c.l.bf16 %v206_v20 }
  0x2b   : > { %240 = vperm.xlu1 %396, %v232_v7   ;;  %222 = vperm.xlu0 %395, %v214_v8  }
  0x95   : > { %v236_v14 = vpop.permute.xlu1 %235  ;;  %v218_v15 = vpop.permute.xlu0 %217 }
  0x96   : > { %v225_v16 = vmul.f32 %v218_v15, %v207_v11  ;;  %v226_v17 = vmul.f32 %v218_v15, %v208_v12  ;;  %v227_v18 = vmul.f32 %v218_v15, %v209_v13 }
  0x98   : > { %v243_v21 = vadd.f32 %v236_v14, %v225_v16  ;;  %v244_v22 = vadd.f32 %v236_v14, %v226_v17  ;;  %v245_v23 = vadd.f32 %v236_v14, %v227_v18 }
  0x9a   : > { %249 = vst [vmem:[%s200_s18] sm:$0xff] %v243_v21 }
  0x9b   : > { %250 = vst [vmem:[%s200_s18 + $0x8] sm:$0xff] %v244_v22 }
  0x9c   : > { %251 = vst [vmem:[%s200_s18 + $0x10] sm:$0xff] %v245_v23 }
  0x9d   : > { %v223_v27 = vpop.permute.xlu0 %222  ;;  %v241_v31 = vpop.permute.xlu1 %240 }
  0x9e   : > { %v228_v28 = vmul.f32 %v223_v27, %v210_v24  ;;  %v229_v29 = vmul.f32 %v223_v27, %v211_v25  ;;  %v230_v30 = vmul.f32 %v223_v27, %v212_v26 }
  0xa0   : > { %v246_v32 = vadd.f32 %v241_v31, %v228_v28  ;;  %v247_v33 = vadd.f32 %v241_v31, %v229_v29  ;;  %v248_v34 = vadd.f32 %v241_v31, %v230_v30  ;;  %261 = sbr.rel (!%p472_p5) target bundleno = 173 (0xad), region = 62 }
  0xa1   : > { %v277_v35 = vld [vmem:[%s200_s18] sm:$0xff] (%p472_p5) }
  0xa2   : > { %252 = vst [vmem:[%s200_s18 + $0x18] sm:$0xff] %v246_v32  ;;  %v279_v36 = vld [vmem:[%s200_s18 + $0x8] sm:$0xff] (%p472_p5) }
  0xa3   : > { %253 = vst [vmem:[%s200_s18 + $0x20] sm:$0xff] %v247_v33  ;;  %v281_v37 = vld [vmem:[%s200_s18 + $0x10] sm:$0xff] (%p472_p5) }
  0xa4   : > { %254 = vst [vmem:[%s200_s18 + $0x28] sm:$0xff] %v248_v34 }
  0xa5   : > { %278 = vst [vmem:[%s264_s23] sm:$0xff] %v277_v35 }
  0xa6   : > { %280 = vst [vmem:[%s264_s23 + $0x8] sm:$0xff] %v279_v36 }
  0xa7   : > { %282 = vst [vmem:[%s264_s23 + $0x10] sm:$0xff] %v281_v37 }
  0xa9   : > { %v283_v38 = vld [vmem:[%s200_s18 + $0x18] sm:$0xff] }
  0xaa   : > { %v285_v39 = vld [vmem:[%s200_s18 + $0x20] sm:$0xff]  ;;  %284 = vst [vmem:[%s264_s23 + $0x30] sm:$0xff] %v283_v38 }
  0xab   : > { %v287_v40 = vld [vmem:[%s200_s18 + $0x28] sm:$0xff]  ;;  %286 = vst [vmem:[%s264_s23 + $0x38] sm:$0xff] %v285_v39 }
  0xac   : > { %288 = vst [vmem:[%s264_s23 + $0x40] sm:$0xff] %v287_v40 }
  0xad PF: > { %p10_p10 = scmp.ge.s32.totalorder %s459_s16, 4   ;;  %s519_s12 = smov %s415_s13 }
  0xae   : > { %s520_s13 = smov %s470_s19  ;;  %s521_s14 = smov %s459_s16 }
  0xaf   :  { %12 = sbr.rel (!%p10_p10) target bundleno = 2 (0x2), region = 122 }

// kernel: mix_channel_conv_bn.2
= control target key start
LH: loop header
LB: loop body
LE: loop exit
PB: predicated region body
PF: predicated region fallthrough
CT: control target
= control target key end

     0   :  { %s1136_s18 = smov 0   ;;  %s1138_s19 = smov 0   ;;  %s1275_s0 = inlined_call_operand.vmem [shape: bf16[4,1152], index: 0, kind: input, shape index: {}, may-alias: {0,1}]   ;;  %s1276_s1 = inlined_call_operand.vmem [shape: bf16[4,1152], index: 1, kind: input, shape index: {}, may-alias: {0,1}]   ;;  %s1277_s2 = inlined_call_operand.vmem [shape: bf16[16,36], index: 2, kind: input, shape index: {}]   ;;  %s1278_s3 = inlined_call_operand.vmem [shape: bf16[16,768], index: 3, kind: output, shape index: {0}]   ;;  %s1279_s4 = inlined_call_operand.vmem [shape: f32[2,16,128], index: 4, kind: output, shape index: {1}]   ;;  %s1280_s5 = inlined_call_operand.vmem [shape: f32[2,16,128], index: 5, kind: output, shape index: {2}]  }
   0x1   :  { %s1140_s20 = smov 0   ;;  %s1142_s21 = smov 0  }
   0x2   :  { %s1144_s22 = smov 0  }
   0x3 LB: > { %s939_s23 = sadd.s32 4294967295, %s1095_s22   ;;  %s28_s24 = sadd.s32 1, %s1091_s21  ;;  %s1095_s22 = sphi %s1144_s22, %s16_s22   ;;  %s1091_s21 = sphi %s1142_s21, %s1285_s21   ;;  %s1087_s20 = sphi %s1140_s20, %s1284_s20   ;;  %s1083_s19 = sphi %s1138_s19, %s1283_s19   ;;  %s1079_s18 = sphi %s1136_s18, %s1282_s18  }
   0x4   : > { %p30_p0 = scmp.ge.s32.totalorder %s28_s24, 2  ;;  %s118_s25 = sadd.s32 1, %s1083_s19 }
   0x5   : > { %p128_p1 = scmp.ne.s32.totalorder %s1083_s19, %s1079_s18  ;;  %p129_p2 = scmp.eq.s32.totalorder %s939_s23, 1 }
   0x6   : > { %s1287_s24 = smov (%p30_p0, %s28_s24), 0  ;;  %p943_p4 = scmp.ge.s32.totalorder %s1095_s22, 1 }
   0x7   : > { %p1168_p3 = por %p129_p2, %p128_p1  ;;  %s115_s27 = ssub.s32 %s1091_s21, %s1287_s24 }
   0x8   : > { %p232_p5 = scmp.lt.s32.totalorder %s1095_s22, 3  ;;  %p116_p6 = scmp.eq.s32.totalorder %s115_s27, 0 }
   0xa   : > { %p233_p7 = pnand %p943_p4, %p232_p5 }
   0xb   : > { %s1177_s28 = scalar_select %p116_p6, %s1083_s19, %s118_s25  }
   0xc   : > { %236 = sbr.rel (%p233_p7) target bundleno = 402 (0x192), region = 32  ;;  %s286_s30 = sadd.s32 (!%p233_p7), 1, %s1087_s20 }
   0xd   : > { %s278_s29 = smul.u32 (!%p233_p7), 3, %s1087_s20  ;;  %s1097_s15 = smov (!%p233_p7), 127  }
   0xe   : > { %s287_s6 = smul.u32 (!%p233_p7), 3, %s286_s30  ;;  %s1098_s16 = smov (!%p233_p7), 126  }
   0xf   : > { %p279_p8 = scmp.lt.s32.totalorder (!%p233_p7), %s278_s29, 8  ;;  %s1099_s17 = smov (!%p233_p7), 109  }
  0x10   : > { %p288_p9 = scmp.lt.s32.totalorder (!%p233_p7), %s287_s6, 8  ;;  %s1100_s23 = smov (!%p233_p7), 108  }
  0x11   : > { %s1289_s29 = smov (!%p279_p8, %s278_s29), 8  ;;  %s1101_s25 = smov 92   ;;  %vm366_vm0 = vcmask 1031168   ;;  %vm345_vm1 = vcmask 1039360   ;;  %vm452_vm2 = vcmask 752640   ;;  %vm343_vm3 = vcmask 1043456  }
  0x12   : > { %s1291_s6 = smov (!%p288_p9, %s287_s6), 8  ;;  %s944_s7 = sshll.u32 %s1289_s29, 1  ;;  %vm409_vm4 = vcmask 891904   ;;  %vm431_vm5 = vcmask 883712   ;;  %vm474_vm6 = vcmask 744448   ;;  %vm495_vm7 = vcmask 736256  }
  0x13   : > { %s282_s10 = scalar_lea.vmem %s1275_s0, %s944_s7  ;;  %s945_s11 = sshll.u32 %s1291_s6, 1  ;;  %vm563_vm8 = vcmask 1041408   ;;  %vm388_vm9 = vcmask 900096   ;;  %vm559_vm10 = vcmask 293888  }
  0x14   : > { %s291_s14 = scalar_lea.vmem %s1276_s1, %s945_s11  ;;  %v316_v0 = vld [vmem:[%s282_s10] sm:$0x3f]  ;;  %s1102_s27 = smov 91  }
  0x15   : > { %317 = vst [vmem:[#allocation2] sm:$0x3f] %v316_v0  ;;  %v318_v1 = vld [vmem:[%s291_s14] sm:$0x3]  ;;  %s1103_s29 = smov 90   ;;  %s1104_s30 = smov 110  }
  0x16   : > { %319 = vst [vmem:[#allocation2 + $0x6] sm:$0x3] %v318_v1  ;;  %s624_s8 = smul.u32 384, %s1087_s20  ;;  %s260_s9 = sand.u32 1, %s1079_s18  }
  0x17   : > { %s1007_s10 = smul.u32 24, %s260_s9  ;;  %p297_p10 = scmp.lt.s32.totalorder %s1087_s20, 1 }
  0x19   : > { %s298_s11 = scalar_select %p297_p10, %s1087_s20, 1 }
  0x1a   : > { %s1238_s12 = scalar_lea.vmem [#allocation4], %s1007_s10 }
  0x1b   : > { %s997_s18 = sshll.u32 %s298_s11, 4 }
  0x1c   : > { %v320_v2 = vld [vmem:[#allocation2] sm:$0x3f] }
  0x1d   : > { %322 = vst [vmem:[#allocation1] ss:$2 sm:$0xff] %v320_v2  ;;  %v329_v3 = vld [vmem:[#allocation2] sm:$0xff] }
  0x24   : > { %v323_v4 = vld.sshfl [vmem:[#allocation1] sm:$0xff pattern:$0x75643120]  ;;  %v324_v5 = vld.sshfl [vmem:[#allocation1 + $0x8] sm:$0xff pattern:$0x75643120] }
  0x25   : > { %332 = vst [vmem:[#allocation1 + $0x1] ss:$2 sm:$0xff] %v329_v3 }
  0x26   : > { %327 = vst [vmem:[#allocation3] sm:$0x33] %v323_v4 }
  0x27   : > { %328 = vst [vmem:[#allocation3 + $0x8] sm:$0x3] %v324_v5 }
  0x2c   : > { %v335_v6 = vld.sshfl [vmem:[#allocation1 + $0x8] sm:$0xff pattern:$0x75643120]  ;;  %v333_v7 = vld.sshfl [vmem:[#allocation1] sm:$0xff pattern:$0x75643120] }
  0x2d   : > { %339 = vrot.lane.b32.xlu1 %v335_v6, %s1097_s15  ;;  %354 = vst [vmem:[#allocation1] ss:$2 sm:$0xff] %v329_v3 }
  0x34   : > { %v355_v8 = vld.sshfl [vmem:[#allocation1] sm:$0xff pattern:$0x75643120]  ;;  %v357_v9 = vld.sshfl [vmem:[#allocation1 + $0x8] sm:$0xff pattern:$0x75643120] }
  0x35   : > { %376 = vst [vmem:[#allocation1 + $0x1] ss:$2 sm:$0xff] %v329_v3  ;;  %361 = vrot.lane.b32.xlu2 %v357_v9, %s1098_s16 }
  0x3c   : > { %v377_v10 = vld.sshfl [vmem:[#allocation1] sm:$0xff pattern:$0x75643120]  ;;  %v379_v11 = vld.sshfl [vmem:[#allocation1 + $0x8] sm:$0xff pattern:$0x75643120] }
  0x3d   : > { %397 = vst [vmem:[#allocation1] ss:$2 sm:$0xff] %v329_v3 }
  0x44   : > { %v400_v12 = vld.sshfl [vmem:[#allocation1 + $0x8] sm:$0xff pattern:$0x75643120]  ;;  %v398_v13 = vld.sshfl [vmem:[#allocation1] sm:$0xff pattern:$0x75643120] }
  0x45   : > { %404 = vrot.lane.b32.xlu1 %v400_v12, %s1099_s17  ;;  %419 = vst [vmem:[#allocation1 + $0x1] ss:$2 sm:$0xff] %v329_v3  ;;  %402 = vrot.lane.b32.xlu0 %v398_v13, %s1099_s17 }
  0x4c   : > { %v422_v14 = vld.sshfl [vmem:[#allocation1 + $0x8] sm:$0xff pattern:$0x75643120]  ;;  %v420_v15 = vld.sshfl [vmem:[#allocation1] sm:$0xff pattern:$0x75643120] }
  0x4d   : > { %426 = vrot.lane.b32.xlu1 %v422_v14, %s1100_s23  ;;  %440 = vst [vmem:[#allocation1] ss:$2 sm:$0xff] %v329_v3 }
  0x54   : > { %v443_v16 = vld.sshfl [vmem:[#allocation1 + $0x8] sm:$0xff pattern:$0x75643120]  ;;  %v441_v17 = vld.sshfl [vmem:[#allocation1] sm:$0xff pattern:$0x75643120] }
  0x55   : > { %424 = vrot.lane.b32.xlu1 %v420_v15, %s1100_s23  ;;  %447 = vrot.lane.b32.xlu2 %v443_v16, %s1101_s25  ;;  %462 = vst [vmem:[#allocation1 + $0x1] ss:$2 sm:$0xff] %v329_v3  ;;  %s306_s23 = scalar_lea.vmem %s1280_s5, %s997_s18 }
  0x5c   : > { %v463_v18 = vld.sshfl [vmem:[#allocation1] sm:$0xff pattern:$0x75643120]  ;;  %v465_v19 = vld.sshfl [vmem:[#allocation1 + $0x8] sm:$0xff pattern:$0x75643120] }
  0x5d   : > { %337 = vrot.lane.b32.xlu1 %v333_v7, %s1097_s15  ;;  %467 = vrot.lane.b32.xlu0 %v463_v18, %s1102_s27  ;;  %483 = vst [vmem:[#allocation1] ss:$2 sm:$0xff] %v329_v3  ;;  %s301_s15 = scalar_lea.vmem %s1279_s4, %s997_s18 }
  0x5e   : > { %445 = vrot.lane.b32.xlu2 %v441_v17, %s1101_s25  ;;  %s1006_s25 = smul.u32 (%p1168_p3), 12, %s1087_s20 }
  0x64   : > { %v486_v20 = vld.sshfl [vmem:[#allocation1 + $0x8] sm:$0xff pattern:$0x75643120]  ;;  %v484_v21 = vld.sshfl [vmem:[#allocation1] sm:$0xff pattern:$0x75643120] }
  0x65   : > { %490 = vrot.lane.b32.xlu0 %v486_v20, %s1103_s29 }
  0x66   : > { %469 = vrot.lane.b32.xlu2 %v465_v19, %s1102_s27 }
  0x6d   : > { %488 = vrot.lane.b32.xlu0 %v484_v21, %s1103_s29 }
  0x6e   : > { %359 = vrot.lane.b32.xlu2 %v355_v8, %s1098_s16 }
  0x75   : > { %383 = vrot.lane.b32.xlu0 %v379_v11, %s1104_s30 }
  0x7d   : > { %381 = vrot.lane.b32.xlu0 %v377_v10, %s1104_s30  ;;  %s773_s30 = scalar_lea.vmem (%p1168_p3), %s1278_s3, %s1006_s25 }
  0x8f   : > { %v362_v22 = vpop.permute.xlu2 %361 }
  0x90   : > { %v364_v23 = vrot.slane %v362_v22, 4 }
  0x92   : > { %v368_v24 = vsel %vm366_vm0, %v362_v22, %v364_v23 }
  0x93   : > { %372 = vst [vmem:[#allocation3 + $0x14] sm:$0x3] %v368_v24 }
  0x9f   : > { %v340_v25 = vpop.permute.xlu1 %339 }
  0xa0   : > { %v342_v26 = vrot.slane %v340_v25, 4 }
  0xa2   : > { %v347_v27 = vsel %vm345_vm1, %v340_v25, %v342_v26 }
  0xa3   : > { %351 = vst [vmem:[#allocation3 + $0x8] sm:$0xc] %v347_v27 }
  0xaf   : > { %v448_v28 = vpop.permute.xlu2 %447 }
  0xb0   : > { %v450_v29 = vrot.slane %v448_v28, 4 }
  0xb2   : > { %v454_v30 = vsel %vm452_vm2, %v448_v28, %v450_v29  ;;  %v964_v28 = vld [vmem:[#allocation3 + $0x8] sm:$0xf] }
  0xb3   : > { %458 = vst [vmem:[#allocation3 + $0x2c] sm:$0x3] %v454_v30 }
  0xb7   : > { %v405_v31 = vpop.permute.xlu1 %404  ;;  %v403_v32 = vpop.permute.xlu0 %402 }
  0xb8   : > { %v407_v33 = vrot.slane %v405_v31, 4  ;;  %v446_v34 = vpop.permute.xlu2 %445  ;;  %v406_v35 = vrot.slane %v403_v32, 4 }
  0xb9   : > { %v449_v36 = vrot.slane %v446_v34, 4 }
  0xba   : > { %v411_v37 = vsel %vm409_vm4, %v405_v31, %v407_v33  ;;  %v408_v38 = vsel %vm343_vm3, %v406_v35, %v407_v33 }
  0xbb   : > { %415 = vst [vmem:[#allocation3 + $0x20] sm:$0x3] %v411_v37  ;;  %v451_v39 = vsel %vm343_vm3, %v449_v36, %v450_v29  ;;  %v410_v40 = vsel %vm409_vm4, %v403_v32, %v408_v38  ;;  %v999_v37 = vld [vmem:[%s1277_s2] sm:$0xff] }
  0xbc   : > { %v453_v41 = vsel %vm452_vm2, %v446_v34, %v451_v39  ;;  %414 = vst [vmem:[#allocation3 + $0x18] sm:$0x33] %v410_v40 }
  0xbd   : > { %457 = vst [vmem:[#allocation3 + $0x24] sm:$0x33] %v453_v41 }
  0xbf   : > { %v427_v42 = vpop.permute.xlu1 %426 }
  0xc0   : > { %v429_v43 = vrot.slane %v427_v42, 4  ;;  %v470_v44 = vpop.permute.xlu2 %469 }
  0xc1   : > { %v472_v45 = vrot.slane %v470_v44, 4 }
  0xc2   : > { %v433_v46 = vsel %vm431_vm5, %v427_v42, %v429_v43 }
  0xc3   : > { %437 = vst [vmem:[#allocation3 + $0x20] sm:$0xc] %v433_v46  ;;  %v476_v47 = vsel %vm474_vm6, %v470_v44, %v472_v45  ;;  %v625_v44 = vlaneseq }
  0xc4   : > { %480 = vst [vmem:[#allocation3 + $0x2c] sm:$0xc] %v476_v47  ;;  %v629_v47 = vstv %s624_s8 }
  0xc7   : > { %v425_v48 = vpop.permute.xlu1 %424 }
  0xc8   : > { %v428_v49 = vrot.slane %v425_v48, 4  ;;  %v360_v50 = vpop.permute.xlu2 %359 }
  0xc9   : > { %v363_v51 = vrot.slane %v360_v50, 4 }
  0xca   : > { %v430_v52 = vsel %vm343_vm3, %v428_v49, %v429_v43  ;;  %v976_v12 = vld [vmem:[#allocation3 + $0x20] sm:$0xf] }
  0xcb   : > { %v432_v53 = vsel %vm431_vm5, %v425_v48, %v430_v52  ;;  %v365_v54 = vsel %vm343_vm3, %v363_v51, %v364_v23  ;;  %v1005_v13 = vld [vmem:[#allocation3 + $0x28] sm:$0xf0] }
  0xcc   : > { %436 = vst [vmem:[#allocation3 + $0x18] sm:$0xcc] %v432_v53  ;;  %v367_v55 = vsel %vm366_vm0, %v360_v50, %v365_v54  ;;  %v977_v16 = vor.u32 %v1005_v13, %v976_v12 }
  0xcd   : > { %371 = vst [vmem:[#allocation3 + $0xc] sm:$0x33] %v367_v55 }
  0xcf   : > { %v338_v56 = vpop.permute.xlu1 %337  ;;  %v468_v57 = vpop.permute.xlu0 %467 }
  0xd0   : > { %v341_v58 = vrot.slane %v338_v56, 4  ;;  %v471_v59 = vrot.slane %v468_v57, 4 }
  0xd2   : > { %v344_v60 = vsel %vm343_vm3, %v341_v58, %v342_v26  ;;  %v473_v61 = vsel %vm343_vm3, %v471_v59, %v472_v45  ;;  %v626_v45 = vand.u32 127, %v625_v44 }
  0xd3   : > { %v346_v62 = vsel %vm345_vm1, %v338_v56, %v344_v60  ;;  %v475_v63 = vsel %vm474_vm6, %v468_v57, %v473_v61  ;;  %v968_v30 = vld [vmem:[#allocation3 + $0x18] sm:$0xf]  ;;  %v1003_v31 = vld [vmem:[#allocation3 + $0x1c] sm:$0xf] }
  0xd4   : > { %350 = vst [vmem:[#allocation3] sm:$0xcc] %v346_v62  ;;  %v628_v46 = vadd.s32 256, %v626_v45  ;;  %v627_v48 = vadd.s32 128, %v626_v45  ;;  %v630_v50 = vadd.s32 %v629_v47, %v626_v45 }
  0xd5   : > { %479 = vst [vmem:[#allocation3 + $0x24] sm:$0xcc] %v475_v63 }
  0xd6   : > { %v632_v49 = vadd.s32 %v629_v47, %v628_v46  ;;  %v631_v51 = vadd.s32 %v629_v47, %v627_v48  ;;  %v1216_v53 = vcvt.s32.f32 %v630_v50 }
  0xd7   : > { %v491_v0 = vpop.permute.xlu0 %490 }
  0xd8   : > { %v493_v1 = vrot.slane %v491_v0, 4  ;;  %v1214_v52 = vcvt.s32.f32 %v632_v49  ;;  %v1218_v54 = vcvt.s32.f32 %v631_v51  ;;  %v639_v56 = vmul.f32 0.055555556, %v1216_v53 }
  0xd9   : > { %v675_v60 = vmul.f32 0.0030864198, %v1216_v53 }
  0xda   : > { %v497_v2 = vsel %vm495_vm7, %v491_v0, %v493_v1  ;;  %v641_v55 = vmul.f32 0.055555556, %v1214_v52  ;;  %v640_v57 = vmul.f32 0.055555556, %v1218_v54  ;;  %v677_v58 = vmul.f32 0.0030864198, %v1214_v52 }
  0xdb   : > { %501 = vst [vmem:[#allocation3 + $0x38] sm:$0x3] %v497_v2  ;;  %v956_v38 = vld [vmem:[#allocation3] sm:$0xf]  ;;  %v1000_v40 = vld [vmem:[#allocation3 + $0x4] sm:$0xf]  ;;  %v642_v61 = vfloor.f32 %v639_v56  ;;  %v678_v2 = vfloor.f32 %v675_v60 }
  0xdc   : > { %v1004_v23 = vld [vmem:[#allocation3 + $0x20] sm:$0xf0]  ;;  %v970_v27 = vld [vmem:[#allocation3 + $0x24] sm:$0xf0]  ;;  %v644_v59 = vfloor.f32 %v641_v55  ;;  %v676_v62 = vmul.f32 0.0030864198, %v1218_v54  ;;  %v643_v63 = vfloor.f32 %v640_v57  ;;  %v680_v0 = vfloor.f32 %v677_v58 }
  0xdd   : > { %v969_v34 = vor.u32 %v1004_v23, %v968_v30  ;;  %v973_v35 = vor.u32 %v1003_v31, %v970_v27 }
  0xdf   : > { %v489_v3 = vpop.permute.xlu0 %488 }
  0xe0   : > { %v492_v4 = vrot.slane %v489_v3, 4 }
  0xe2   : > { %v494_v5 = vsel %vm343_vm3, %v492_v4, %v493_v1  ;;  %v513_v6 = vld [vmem:[#allocation3 + $0x38] sm:$0x3]  ;;  %v647_v1 = vmul.f32 18.0, %v644_v59  ;;  %v679_v4 = vfloor.f32 %v676_v62 }
  0xe3   : > { %v496_v7 = vsel %vm495_vm7, %v489_v3, %v494_v5  ;;  %v543_v8 = vunpack.c.l.b16 %v513_v6  ;;  %v645_v3 = vmul.f32 18.0, %v642_v61  ;;  %v646_v5 = vmul.f32 18.0, %v643_v63 }
  0xe4   : > { %500 = vst [vmem:[#allocation3 + $0x30] sm:$0x33] %v496_v7  ;;  %v683_v6 = vmul.f32 324.0, %v680_v0  ;;  %v650_v7 = vsub.f32 %v1214_v52, %v647_v1  ;;  %vm638_vm7 = vcmp.lt.f32.partialorder %v1214_v52, 648.0 }
  0xe5   : > { %v552_v9 = vpack.c.b16 %v543_v8, %v543_v8  ;;  %v681_v8 = vmul.f32 324.0, %v678_v2 }
  0xe6   : > { %v686_v12 = vsub.f32 %v1214_v52, %v683_v6  ;;  %v983_v13 = vadd.f32 -18.0, %v650_v7  ;;  %vm653_vm11 = vcmp.ge.f32.partialorder %v650_v7, 18.0 }
  0xe7   : > { %v384_v10 = vpop.permute.xlu0 %383  ;;  %v571_v11 = vsel %vm563_vm8, %v552_v9, 0  ;;  %v648_v9 = vsub.f32 %v1216_v53, %v645_v3 }
  0xe8   : > { %v386_v14 = vrot.slane %v384_v10, 4  ;;  %606 = vmatpush.bf16.msra.mxu2 %v571_v11  ;;  %v649_v11 = vsub.f32 %v1218_v54, %v646_v5  ;;  %vm689_vm14 = vcmp.ge.f32.partialorder %v686_v12, 324.0 }
  0xe9   : > { %vm651_vm12 = vcmp.ge.f32.partialorder %v648_v9, 18.0 }
  0xea   : > { %v390_v15 = vsel %vm388_vm9, %v384_v10, %v386_v14  ;;  %v682_v10 = vmul.f32 324.0, %v679_v4  ;;  %vm652_vm13 = vcmp.ge.f32.partialorder %v649_v11, 18.0 }
  0xeb   : > { %394 = vst [vmem:[#allocation3 + $0x14] sm:$0xc] %v390_v15  ;;  %v512_v17 = vld [vmem:[#allocation3 + $0x30] sm:$0x33]  ;;  %v981_v15 = vadd.f32 -18.0, %v648_v9 }
  0xec   : > { %607 = vmatpush.bf16.msra.mxu2 %v977_v16  ;;  %v541_v18 = vunpack.c.l.b16 %v512_v17  ;;  %v542_v19 = vunpack.c.h.b16 %v512_v17  ;;  %v685_v16 = vsub.f32 %v1218_v54, %v682_v10  ;;  %v982_v17 = vadd.f32 -18.0, %v649_v11 }
  0xee   : > { %v550_v20 = vpack.c.b16 %v541_v18, %v541_v18  ;;  %v551_v21 = vpack.c.b16 %v542_v19, %v542_v19  ;;  %v986_v18 = vadd.f32 -324.0, %v686_v12  ;;  %v659_v19 = vsel %vm653_vm11, %v983_v13, %v650_v7 }
  0xef   : > { %v382_v22 = vpop.permute.xlu0 %381  ;;  %v658_v23 = vsel %vm652_vm13, %v982_v17, %v649_v11  ;;  %vm688_vm0 = vcmp.ge.f32.partialorder %v685_v16, 324.0  ;;  %vm662_vm1 = vcmp.lt.f32.partialorder %v659_v19, 0.0  ;;  %vm637_vm11 = vcmp.lt.f32.partialorder %v1218_v54, 648.0 }
  0xf0   : > { %v385_v24 = vrot.slane %v382_v22, 4  ;;  %v565_v25 = vsel %vm563_vm8, %v550_v20, 0  ;;  %v568_v26 = vsel %vm563_vm8, %v551_v21, 0  ;;  %v657_v21 = vsel %vm651_vm12, %v981_v15, %v648_v9 }
  0xf1   : > { %578 = vmatpush.bf16.msra.mxu0 %v565_v25  ;;  %592 = vmatpush.bf16.msra.mxu1 %v568_v26  ;;  %v695_v25 = vsel %vm689_vm14, %v986_v18, %v686_v12  ;;  %v663_v26 = vadd.f32 18.0, %v657_v21  ;;  %vm660_vm2 = vcmp.lt.f32.partialorder %v657_v21, 0.0 }
  0xf2   : > { %v387_v29 = vsel %vm343_vm3, %v385_v24, %v386_v14  ;;  %v1002_v32 = vld [vmem:[#allocation3 + $0x10] sm:$0xf0]  ;;  %v684_v14 = vsub.f32 %v1216_v53, %v681_v8  ;;  %v665_v24 = vadd.f32 18.0, %v659_v19  ;;  %v701_v30 = vadd.f32 324.0, %v695_v25 }
  0xf3   : > { %v389_v33 = vsel %vm388_vm9, %v382_v22, %v387_v29  ;;  %v965_v36 = vor.u32 %v1002_v32, %v964_v28  ;;  %v985_v22 = vadd.f32 -324.0, %v685_v16  ;;  %v664_v28 = vadd.f32 18.0, %v658_v23 }
  0xf4   : > { %393 = vst [vmem:[#allocation3 + $0xc] sm:$0xcc] %v389_v33  ;;  %v984_v20 = vadd.f32 -324.0, %v684_v14  ;;  %vm687_vm15 = vcmp.ge.f32.partialorder %v684_v14, 324.0  ;;  %vm661_vm3 = vcmp.lt.f32.partialorder %v658_v23, 0.0  ;;  %v668_v31 = vsel %vm662_vm1, %v665_v24, %v659_v19 }
  0xf5   : > { %579 = vmatpush.bf16.msra.mxu0 %v969_v34  ;;  %593 = vmatpush.bf16.msra.mxu1 %v973_v35  ;;  %v694_v29 = vsel %vm688_vm0, %v985_v22, %v685_v16  ;;  %vm698_vm4 = vcmp.lt.f32.partialorder %v695_v25, 0.0  ;;  %v666_v33 = vsel %vm660_vm2, %v663_v26, %v657_v21  ;;  %v667_v35 = vsel %vm661_vm3, %v664_v28, %v658_v23 }
  0xf6   : > { %608 = vmatpush.bf16.msra.mxu2 %v965_v36  ;;  %v693_v27 = vsel %vm687_vm15, %v984_v20, %v684_v14  ;;  %v700_v34 = vadd.f32 324.0, %v694_v29  ;;  %vm697_vm6 = vcmp.lt.f32.partialorder %v694_v29, 0.0  ;;  %vm671_vm8 = vcmp.lt.f32.partialorder %v668_v31, 16.0 }
  0xf7   : > { %v699_v32 = vadd.f32 324.0, %v693_v27  ;;  %vm696_vm5 = vcmp.lt.f32.partialorder %v693_v27, 0.0  ;;  %v704_v36 = vsel %vm698_vm4, %v701_v30, %v695_v25  ;;  %vm636_vm9 = vcmp.lt.f32.partialorder %v1216_v53, 648.0  ;;  %vm674_vm13 = vmand %vm638_vm7, %vm671_vm8 }
  0xf8   : > { %vm670_vm12 = vcmp.lt.f32.partialorder %v667_v35, 16.0  ;;  %vm707_vm14 = vcmp.lt.f32.partialorder %v704_v36, 288.0 }
  0xf9   : > { %980 = vmatmul.msk.bf16.vlgmr.msra.gmra.mxu2 %vm559_vm10, %v999_v37  ;;  %vm673_vm1 = vmand %vm637_vm11, %vm670_vm12 }
  0xfa   : > { %vm710_vm3 = vmand %vm674_vm13, %vm707_vm14 }
  0xfb   : > { %v1001_v39 = vld [vmem:[#allocation3 + $0x8] sm:$0xf0]  ;;  %v958_v41 = vld [vmem:[#allocation3 + $0xc] sm:$0xf0] }
  0xfc   : > { %v957_v42 = vor.u32 %v1001_v39, %v956_v38  ;;  %v961_v43 = vor.u32 %v1000_v40, %v958_v41  ;;  %v703_v38 = vsel %vm697_vm6, %v700_v34, %v694_v29  ;;  %v1105_v40 = vmov 0.0  }
  0xfd   : > { %vm706_vm2 = vcmp.lt.f32.partialorder %v703_v38, 288.0  ;;  %v989_v41 = vsel %vm710_vm3, 1.0, %v1105_v40 }
  0xfe   : > { %580 = vmatpush.bf16.msra.mxu0 %v957_v42  ;;  %594 = vmatpush.bf16.msra.mxu1 %v961_v43 }
 0x101   : > { %978 = vmatmul.msk.bf16.vlgmr.msra.gmra.mxu0 %vm559_vm10, %v999_v37  ;;  %979 = vmatmul.msk.bf16.vlgmr.msra.gmra.mxu1 %vm559_vm10, %v999_v37  ;;  %vm669_vm10 = vcmp.lt.f32.partialorder %v666_v33, 16.0  ;;  %v702_v37 = vsel %vm696_vm5, %v699_v32, %v693_v27  ;;  %vm709_vm5 = vmand %vm673_vm1, %vm706_vm2 }
 0x102   : > { %vm672_vm15 = vmand %vm636_vm9, %vm669_vm10  ;;  %vm705_vm0 = vcmp.lt.f32.partialorder %v702_v37, 288.0  ;;  %v988_v43 = vsel %vm709_vm5, 1.0, %v1105_v40 }
 0x103   : > { %vm708_vm4 = vmand %vm672_vm15, %vm705_vm0 }
 0x104   : > { %v987_v42 = vsel %vm708_vm4, 1.0, %v1105_v40 }
 0x17c   : > { %v610_v39 = vpop.f32.mrf.mxu2 }
 0x17d   : > { %v616_v44 = vpack.c.bf16 %v610_v39, %v610_v39  ;;  %v719_v48 = vmul.f32 %v989_v41, %v610_v39 }
 0x17e   : > { %v582_v45 = vpop.f32.mrf.mxu0  ;;  %v596_v46 = vpop.f32.mrf.mxu1 }
 0x17f   : > { %620 = vst [vmem:[%s1238_s12 + $0x8] sm:$0xf] %v616_v44  ;;  %v615_v47 = vpack.c.bf16 %v596_v46, %v582_v45  ;;  %v717_v49 = vmul.f32 %v987_v42, %v582_v45  ;;  %v718_v50 = vmul.f32 %v988_v43, %v596_v46  ;;  %v737_v54 = vmul.f32 %v719_v48, %v610_v39 }
 0x181   : > { %619 = vst [vmem:[%s1238_s12] sm:$0xff] %v615_v47  ;;  %v725_v51 = vmul.f32 %v717_v49, %v582_v45  ;;  %v729_v52 = vadd.f32 %v718_v50, %v717_v49  ;;  %v731_v53 = vmul.f32 %v718_v50, %v596_v46 }
 0x183   : > { %v733_v55 = vadd.f32 %v731_v53, %v725_v51  ;;  %v735_v56 = vadd.f32 %v729_v52, %v719_v48 }
 0x184   : > { %v612_v57 = vpop.f32.mrf.mxu2 }
 0x185   : > { %v618_v58 = vpack.c.bf16 %v612_v57, %v612_v57  ;;  %v739_v59 = vadd.f32 %v737_v54, %v733_v55  ;;  %v722_v62 = vmul.f32 %v989_v41, %v612_v57  ;;  %745 = vst [vmem:[%s301_s15] sm:$0xff] %v735_v56 }
 0x186   : > { %v584_v60 = vpop.f32.mrf.mxu0  ;;  %v598_v61 = vpop.f32.mrf.mxu1  ;;  %v991_v11 = vld [vmem:[%s1238_s12 + $0x8] sm:$0xf] (%p1168_p3) }
 0x187   : > { %622 = vst [vmem:[%s1238_s12 + $0x14] sm:$0xf] %v618_v58  ;;  %v720_v63 = vmul.f32 %v987_v42, %v584_v60  ;;  %v617_v0 = vpack.c.bf16 %v598_v61, %v584_v60  ;;  %v721_v1 = vmul.f32 %v988_v43, %v598_v61  ;;  %v738_v5 = vmul.f32 %v722_v62, %v612_v57 }
 0x188   : > { %751 = vst [vmem:[%s306_s23] sm:$0xff] %v739_v59  ;;  %v788_v9 = vld [vmem:[%s1238_s12] sm:$0xff] (%p1168_p3) }
 0x189   : > { %v726_v2 = vmul.f32 %v720_v63, %v584_v60  ;;  %621 = vst [vmem:[%s1238_s12 + $0xc] sm:$0xff] %v617_v0  ;;  %v730_v3 = vadd.f32 %v721_v1, %v720_v63  ;;  %v732_v4 = vmul.f32 %v721_v1, %v598_v61 }
 0x18a   : > { %789 = vst [vmem:[%s773_s30] sm:$0xff] (%p1168_p3), %v788_v9 }
 0x18b   : > { %v734_v6 = vadd.f32 %v732_v4, %v726_v2  ;;  %v736_v7 = vadd.f32 %v730_v3, %v722_v62  ;;  %769 = sbr.rel (!%p1168_p3) target bundleno = 402 (0x192), region = 40  ;;  %992 = vst [vmem:[%s773_s30 + $0x8] sm:$0xf] (%p1168_p3), %v991_v11 }
 0x18d   : > { %v740_v8 = vadd.f32 %v738_v5, %v734_v6  ;;  %746 = vst [vmem:[%s301_s15 + $0x8] sm:$0xff] %v736_v7 }
 0x18e   : > { %v993_v12 = vld [vmem:[%s1238_s12 + $0x14] sm:$0xf] (%p1168_p3) }
 0x18f   : > { %752 = vst [vmem:[%s306_s23 + $0x8] sm:$0xff] %v740_v8 }
 0x190   : > { %v790_v10 = vld [vmem:[%s1238_s12 + $0xc] sm:$0xff]  ;;  %994 = vst [vmem:[%s773_s30 + $0x20] sm:$0xf] %v993_v12 }
 0x191   : > { %791 = vst [vmem:[%s773_s30 + $0x18] sm:$0xff] %v790_v10 }
 0x192 PF: > { %s16_s22 = sadd.s32 1, %s1095_s22   ;;  %s1282_s18 = smov %s1083_s19 }
 0x193   : > { %p13_p11 = scmp.ge.s32.totalorder %s16_s22, 4   ;;  %s1283_s19 = smov %s1177_s28 }
 0x194   : > { %s1284_s20 = smov %s1091_s21  ;;  %s1285_s21 = smov %s1287_s24 }
 0x195   :  { %15 = sbr.rel (!%p13_p11) target bundleno = 3 (0x3), region = 129 }

</bundles_post_ra>
